<compile_context>
chip_gen: v7x
topology: tpu7x:2x2x1
jax: 0.10.0
libtpu: 0.0.40
codegen_flags: <defaults>
</compile_context>

<pallas_src>
import functools

import jax
import jax.numpy as jnp
from jax.experimental import pallas as pl
from jax.experimental.pallas import tpu as pltpu

_LANE = 128


def _cdiv(a, b):
    return (a + b - 1) // b


def _specaugment_kernel(fstart_ref, fwidth_ref, tstart_ref, twidth_ref,
                        x_ref, o_ref, *, mF, mT, bb, tile_t):
    """Zero mF frequency bands (batch-shared) and mT time bands (per row)."""
    b_blk = pl.program_id(0)
    t_blk = pl.program_id(1)
    n_freq = x_ref.shape[1]

    if mF == 0 and mT == 0:          # static path; wrapper also short-circuits
        o_ref[...] = x_ref[...]
        return

    # ---- separable frequency keep-mask: one (F, 1) sublane column ----------
    keep_f = None
    if mF > 0:
        f_idx = jax.lax.broadcasted_iota(jnp.int32, (n_freq, 1), 0)
        for i in range(mF):
            s = fstart_ref[i]
            w = fwidth_ref[i]
            band = jnp.logical_or(f_idx < s, f_idx >= s + w)
            keep_f = band if keep_f is None else jnp.logical_and(keep_f, band)

    # ---- global time coordinates of this block's lanes ----------------------
    t_idx = None
    if mT > 0:
        t_idx = (jax.lax.broadcasted_iota(jnp.int32, (1, tile_t), 1)
                 + t_blk * tile_t)

    # bb is a small, static number of batch rows packed into this block.
    for r in range(bb):
        x = x_ref[r]                                  # (n_freq, tile_t)
        keep = keep_f
        if mT > 0:
            base = (b_blk * bb + r) * mT
            keep_t = None
            for j in range(mT):
                s = tstart_ref[base + j]
                w = twidth_ref[base + j]
                band = jnp.logical_or(t_idx < s, t_idx >= s + w)
                keep_t = band if keep_t is None else jnp.logical_and(keep_t, band)
            keep = keep_t if keep is None else jnp.logical_and(keep, keep_t)
        o_ref[r] = jnp.where(keep, x, jnp.zeros_like(x))


def spec_augment(samples, lengths, key, *, mF, F, mT, pS, training=True):
    """JAX/Pallas equivalent of SpecAugment.forward(samples, lengths)."""
    if not training or (mF == 0 and mT == 0):
        return samples

    B, n_freq, n_time = samples.shape
    dtype = samples.dtype
    itemsize = jnp.dtype(dtype).itemsize
    kf, kt = jax.random.split(key)

    # ---- frequency mask params (batch-shared, iid_masks=False) --------------
    # torchaudio mask_along_axis: width = floor(U*F), start = floor(U*(size-value)).
    n_f = max(mF, 1)
    uf = jax.random.uniform(kf, (n_f, 2), dtype=jnp.float32)
    f_val = uf[:, 0] * float(F)
    f_min = jnp.maximum(uf[:, 1] * (float(n_freq) - f_val), 0.0)  # guard F > n_freq
    f_start = jnp.floor(f_min).astype(jnp.int32)                  # (mF,)
    f_width = jnp.floor(f_val).astype(jnp.int32)                  # (mF,)

    # ---- time mask params, per batch element, inside [:lengths[b]] ----------
    # mask_param = int(pS * lengths[b])  (adaptive SpecAugment variant).
    n_t = max(mT, 1)
    lengths_f = lengths.astype(jnp.float32)
    t_param = jnp.floor(pS * lengths_f)
    ut = jax.random.uniform(kt, (B, n_t, 2), dtype=jnp.float32)
    t_val = ut[..., 0] * t_param[:, None]
    t_min = jnp.maximum(ut[..., 1] * (lengths_f[:, None] - t_val), 0.0)
    t_start = jnp.floor(t_min).astype(jnp.int32).reshape(-1)      # (B*mT,) 1D SMEM
    t_width = jnp.floor(t_val).astype(jnp.int32).reshape(-1)

    # ---- tiling: no padding, no post-slice (exactly 1R + 1W of HBM) ---------
    target_block_bytes = 4 * 1024 * 1024
    row_bytes = n_freq * itemsize
    lanes_budget = max(_LANE, (target_block_bytes // row_bytes) // _LANE * _LANE)
    if n_time <= lanes_budget:
        tile_t = n_time                 # full-dim block: exempt from the 128 rule
    else:
        tile_t = int(lanes_budget)      # multiple of 128; Pallas masks ragged tail
    n_t_blocks = _cdiv(n_time, tile_t)

    # Pack several batch rows per block when one row is small (fewer grid steps).
    bb = 1
    if n_t_blocks == 1:
        row_block_bytes = n_freq * tile_t * itemsize
        max_bb = max(1, target_block_bytes // max(row_block_bytes, 1))
        for cand in range(min(B, max_bb), 0, -1):
            if B % cand == 0:
                bb = cand
                break
    # Keep >=2 parallel grid points when possible (both v7x TensorCores busy).
    if (B // bb) * n_t_blocks < 2:
        if bb > 1:
            for cand in range(bb // 2, 0, -1):
                if B % cand == 0:
                    bb = cand
                    break
        elif n_t_blocks == 1 and n_time >= 2 * _LANE:
            tile_t = _cdiv(_cdiv(n_time, 2), _LANE) * _LANE
            n_t_blocks = _cdiv(n_time, tile_t)

    block_bytes = bb * n_freq * tile_t * itemsize
    mask_bytes = n_freq * tile_t * 4          # materialized keep-mask temporaries
    vmem_limit = int(min(max(4 * block_bytes + 4 * mask_bytes + (4 << 20),
                             16 << 20),
                         48 << 20))

    kernel = functools.partial(_specaugment_kernel, mF=mF, mT=mT, bb=bb,
                               tile_t=tile_t)

    grid = (B // bb, n_t_blocks)
    grid_spec = pltpu.PrefetchScalarGridSpec(
        num_scalar_prefetch=4,
        grid=grid,
        in_specs=[
            pl.BlockSpec((bb, n_freq, tile_t),
                         lambda b, t, fs, fw, ts, tw: (b, 0, t)),
        ],
        out_specs=pl.BlockSpec((bb, n_freq, tile_t),
                               lambda b, t, fs, fw, ts, tw: (b, 0, t)),
    )

    cost = pl.CostEstimate(
        flops=2 * B * n_freq * n_time,          # compare + select per element
        transcendentals=0,
        bytes_accessed=2 * B * n_freq * n_time * itemsize,
    )

    return pl.pallas_call(
        kernel,
        out_shape=jax.ShapeDtypeStruct((B, n_freq, n_time), dtype),
        grid_spec=grid_spec,
        compiler_params=pltpu.CompilerParams(
            dimension_semantics=("parallel", "parallel"),
            vmem_limit_bytes=vmem_limit),
        cost_estimate=cost,
    )(f_start, f_width, t_start, t_width, samples)


if __name__ == "__main__":
    key = jax.random.PRNGKey(0)
    k_data, k_aug = jax.random.split(key)

    # Deliberately not (8,128)-aligned to exercise the no-padding path, and
    # B=4 so batch-row packing (bb=2) and a 2-point parallel grid are used.
    B, n_freq, n_time = 4, 20, 200
    samples = jax.random.normal(k_data, (B, n_freq, n_time), dtype=jnp.float32)
    lengths = jnp.array([200, 150, 180, 96], dtype=jnp.int32)

    out = spec_augment(samples, lengths, k_aug,
                       mF=2, F=6, mT=2, pS=0.2, training=True)
    jax.block_until_ready(out)

    assert out.shape == samples.shape and out.dtype == samples.dtype
    # Every element must either pass through unchanged or be zeroed by a mask.
    assert bool(jnp.all((out == samples) | (out == 0.0)))

    # Fast paths: eval mode and no-mask config return the input untouched.
    out_eval = spec_augment(samples, lengths, k_aug,
                            mF=2, F=6, mT=2, pS=0.2, training=False)
    assert bool(jnp.all(out_eval == samples))
    out_nomask = spec_augment(samples, lengths, k_aug,
                              mF=0, F=0, mT=0, pS=0.0, training=True)
    assert bool(jnp.all(out_nomask == samples))

    print("KERNEL_OK")
</pallas_src>

<mosaic_0001>
module attributes {stable_mosaic.version = 11 : i64} {
  func.func @_specaugment_kernel(%arg0: i32, %arg1: i32, %arg2: memref<2xi32, #tpu.memory_space<smem>>, %arg3: memref<2xi32, #tpu.memory_space<smem>>, %arg4: memref<8xi32, #tpu.memory_space<smem>>, %arg5: memref<8xi32, #tpu.memory_space<smem>>, %arg6: memref<2x20x200xf32, #tpu.memory_space<vmem>>, %arg7: memref<2x20x200xf32, #tpu.memory_space<vmem>>) attributes {dimension_semantics = [#tpu.dimension_semantics<parallel>, #tpu.dimension_semantics<parallel>], iteration_bounds = array<i64: 2, 1>, scalar_prefetch = 4 : i64, scratch_operands = 0 : i64, tpu.core_type = #tpu.core_type<tc>, window_params = [{transform_indices = @transform_0, window_bounds = array<i64: 2, 20, 200>}, {transform_indices = @transform_1, window_bounds = array<i64: 2, 20, 200>}]} {
    %0 = tpu.iota {dimensions = array<i32: 0>} : vector<20x1xi32>
    %c0 = arith.constant 0 : index
    %1 = memref.load %arg2[%c0] : memref<2xi32, #tpu.memory_space<smem>>
    %c0_0 = arith.constant 0 : index
    %2 = memref.load %arg3[%c0_0] : memref<2xi32, #tpu.memory_space<smem>>
    %3 = vector.broadcast %1 : i32 to vector<20x1xi32>
    %4 = arith.cmpi slt, %0, %3 : vector<20x1xi32>
    %5 = arith.addi %1, %2 : i32
    %6 = vector.broadcast %5 : i32 to vector<20x1xi32>
    %7 = arith.cmpi sge, %0, %6 : vector<20x1xi32>
    %8 = arith.ori %4, %7 : vector<20x1xi1>
    %c1 = arith.constant 1 : index
    %9 = memref.load %arg2[%c1] : memref<2xi32, #tpu.memory_space<smem>>
    %c1_1 = arith.constant 1 : index
    %10 = memref.load %arg3[%c1_1] : memref<2xi32, #tpu.memory_space<smem>>
    %11 = vector.broadcast %9 : i32 to vector<20x1xi32>
    %12 = arith.cmpi slt, %0, %11 : vector<20x1xi32>
    %13 = arith.addi %9, %10 : i32
    %14 = vector.broadcast %13 : i32 to vector<20x1xi32>
    %15 = arith.cmpi sge, %0, %14 : vector<20x1xi32>
    %16 = arith.ori %12, %15 : vector<20x1xi1>
    %17 = arith.andi %8, %16 : vector<20x1xi1>
    %18 = tpu.iota {dimensions = array<i32: 1>} : vector<1x200xi32>
    %c200_i32 = arith.constant 200 : i32
    %19 = arith.muli %arg1, %c200_i32 : i32
    %20 = vector.broadcast %19 : i32 to vector<1x200xi32>
    %21 = arith.addi %18, %20 : vector<1x200xi32>
    %c0_2 = arith.constant 0 : index
    %c0_3 = arith.constant 0 : index
    %c0_4 = arith.constant 0 : index
    %22 = vector.load %arg6[%c0_2, %c0_3, %c0_4] : memref<2x20x200xf32, #tpu.memory_space<vmem>>, vector<1x20x200xf32>
    %23 = vector.shape_cast %22 : vector<1x20x200xf32> to vector<20x200xf32>
    %c2_i32 = arith.constant 2 : i32
    %24 = arith.muli %arg0, %c2_i32 : i32
    %c0_i32 = arith.constant 0 : i32
    %25 = arith.addi %24, %c0_i32 : i32
    %c2_i32_5 = arith.constant 2 : i32
    %26 = arith.muli %25, %c2_i32_5 : i32
    %c0_i32_6 = arith.constant 0 : i32
    %27 = arith.addi %26, %c0_i32_6 : i32
    %28 = arith.index_cast %27 : i32 to index
    %29 = memref.load %arg4[%28] : memref<8xi32, #tpu.memory_space<smem>>
    %c0_i32_7 = arith.constant 0 : i32
    %30 = arith.addi %26, %c0_i32_7 : i32
    %31 = arith.index_cast %30 : i32 to index
    %32 = memref.load %arg5[%31] : memref<8xi32, #tpu.memory_space<smem>>
    %33 = vector.broadcast %29 : i32 to vector<1x200xi32>
    %34 = arith.cmpi slt, %21, %33 : vector<1x200xi32>
    %35 = arith.addi %29, %32 : i32
    %36 = vector.broadcast %35 : i32 to vector<1x200xi32>
    %37 = arith.cmpi sge, %21, %36 : vector<1x200xi32>
    %38 = arith.ori %34, %37 : vector<1x200xi1>
    %c1_i32 = arith.constant 1 : i32
    %39 = arith.addi %26, %c1_i32 : i32
    %40 = arith.index_cast %39 : i32 to index
    %41 = memref.load %arg4[%40] : memref<8xi32, #tpu.memory_space<smem>>
    %c1_i32_8 = arith.constant 1 : i32
    %42 = arith.addi %26, %c1_i32_8 : i32
    %43 = arith.index_cast %42 : i32 to index
    %44 = memref.load %arg5[%43] : memref<8xi32, #tpu.memory_space<smem>>
    %45 = vector.broadcast %41 : i32 to vector<1x200xi32>
    %46 = arith.cmpi slt, %21, %45 : vector<1x200xi32>
    %47 = arith.addi %41, %44 : i32
    %48 = vector.broadcast %47 : i32 to vector<1x200xi32>
    %49 = arith.cmpi sge, %21, %48 : vector<1x200xi32>
    %50 = arith.ori %46, %49 : vector<1x200xi1>
    %51 = arith.andi %38, %50 : vector<1x200xi1>
    %52 = vector.broadcast %17 : vector<20x1xi1> to vector<20x200xi1>
    %53 = vector.broadcast %51 : vector<1x200xi1> to vector<20x200xi1>
    %54 = arith.andi %52, %53 : vector<20x200xi1>
    %cst = arith.constant 0.000000e+00 : f32
    %55 = vector.broadcast %cst : f32 to vector<20x200xf32>
    %56 = arith.select %54, %23, %55 : vector<20x200xi1>, vector<20x200xf32>
    %c0_9 = arith.constant 0 : index
    %c0_10 = arith.constant 0 : index
    %c0_11 = arith.constant 0 : index
    %57 = vector.load %arg7[%c0_9, %c0_10, %c0_11] : memref<2x20x200xf32, #tpu.memory_space<vmem>>, vector<1x20x200xf32>
    %58 = vector.shape_cast %57 : vector<1x20x200xf32> to vector<20x200xf32>
    %59 = vector.shape_cast %56 : vector<20x200xf32> to vector<1x20x200xf32>
    tpu.vector_store %arg7[%c0_9, %c0_10, %c0_11], %59 {strides = array<i32>} : memref<2x20x200xf32, #tpu.memory_space<vmem>>, vector<1x20x200xf32>,
    %c1_12 = arith.constant 1 : index
    %c0_13 = arith.constant 0 : index
    %c0_14 = arith.constant 0 : index
    %60 = vector.load %arg6[%c1_12, %c0_13, %c0_14] : memref<2x20x200xf32, #tpu.memory_space<vmem>>, vector<1x20x200xf32>
    %61 = vector.shape_cast %60 : vector<1x20x200xf32> to vector<20x200xf32>
    %c2_i32_15 = arith.constant 2 : i32
    %62 = arith.muli %arg0, %c2_i32_15 : i32
    %c1_i32_16 = arith.constant 1 : i32
    %63 = arith.addi %62, %c1_i32_16 : i32
    %c2_i32_17 = arith.constant 2 : i32
    %64 = arith.muli %63, %c2_i32_17 : i32
    %c0_i32_18 = arith.constant 0 : i32
    %65 = arith.addi %64, %c0_i32_18 : i32
    %66 = arith.index_cast %65 : i32 to index
    %67 = memref.load %arg4[%66] : memref<8xi32, #tpu.memory_space<smem>>
    %c0_i32_19 = arith.constant 0 : i32
    %68 = arith.addi %64, %c0_i32_19 : i32
    %69 = arith.index_cast %68 : i32 to index
    %70 = memref.load %arg5[%69] : memref<8xi32, #tpu.memory_space<smem>>
    %71 = vector.broadcast %67 : i32 to vector<1x200xi32>
    %72 = arith.cmpi slt, %21, %71 : vector<1x200xi32>
    %73 = arith.addi %67, %70 : i32
    %74 = vector.broadcast %73 : i32 to vector<1x200xi32>
    %75 = arith.cmpi sge, %21, %74 : vector<1x200xi32>
    %76 = arith.ori %72, %75 : vector<1x200xi1>
    %c1_i32_20 = arith.constant 1 : i32
    %77 = arith.addi %64, %c1_i32_20 : i32
    %78 = arith.index_cast %77 : i32 to index
    %79 = memref.load %arg4[%78] : memref<8xi32, #tpu.memory_space<smem>>
    %c1_i32_21 = arith.constant 1 : i32
    %80 = arith.addi %64, %c1_i32_21 : i32
    %81 = arith.index_cast %80 : i32 to index
    %82 = memref.load %arg5[%81] : memref<8xi32, #tpu.memory_space<smem>>
    %83 = vector.broadcast %79 : i32 to vector<1x200xi32>
    %84 = arith.cmpi slt, %21, %83 : vector<1x200xi32>
    %85 = arith.addi %79, %82 : i32
    %86 = vector.broadcast %85 : i32 to vector<1x200xi32>
    %87 = arith.cmpi sge, %21, %86 : vector<1x200xi32>
    %88 = arith.ori %84, %87 : vector<1x200xi1>
    %89 = arith.andi %76, %88 : vector<1x200xi1>
    %90 = vector.broadcast %17 : vector<20x1xi1> to vector<20x200xi1>
    %91 = vector.broadcast %89 : vector<1x200xi1> to vector<20x200xi1>
    %92 = arith.andi %90, %91 : vector<20x200xi1>
    %cst_22 = arith.constant 0.000000e+00 : f32
    %93 = vector.broadcast %cst_22 : f32 to vector<20x200xf32>
    %94 = arith.select %92, %61, %93 : vector<20x200xi1>, vector<20x200xf32>
    %c1_23 = arith.constant 1 : index
    %c0_24 = arith.constant 0 : index
    %c0_25 = arith.constant 0 : index
    %95 = vector.load %arg7[%c1_23, %c0_24, %c0_25] : memref<2x20x200xf32, #tpu.memory_space<vmem>>, vector<1x20x200xf32>
    %96 = vector.shape_cast %95 : vector<1x20x200xf32> to vector<20x200xf32>
    %97 = vector.shape_cast %94 : vector<20x200xf32> to vector<1x20x200xf32>
    tpu.vector_store %arg7[%c1_23, %c0_24, %c0_25], %97 {strides = array<i32>} : memref<2x20x200xf32, #tpu.memory_space<vmem>>, vector<1x20x200xf32>,
    return
  }
  func.func @transform_0(%arg0: i32, %arg1: i32, %arg2: memref<2xi32, #tpu.memory_space<smem>>, %arg3: memref<2xi32, #tpu.memory_space<smem>>, %arg4: memref<8xi32, #tpu.memory_space<smem>>, %arg5: memref<8xi32, #tpu.memory_space<smem>>) -> (i32, i32, i32) {
    %c0_i32 = arith.constant 0 : i32
    %c0_i32_0 = arith.constant 0 : i32
    return %arg0, %c0_i32, %arg1 : i32, i32, i32
  }
  func.func @transform_1(%arg0: i32, %arg1: i32, %arg2: memref<2xi32, #tpu.memory_space<smem>>, %arg3: memref<2xi32, #tpu.memory_space<smem>>, %arg4: memref<8xi32, #tpu.memory_space<smem>>, %arg5: memref<8xi32, #tpu.memory_space<smem>>) -> (i32, i32, i32) {
    %c0_i32 = arith.constant 0 : i32
    %c0_i32_0 = arith.constant 0 : i32
    return %arg0, %c0_i32, %arg1 : i32, i32, i32
  }
}

</mosaic_0001>

<bundles_post_ra>
// kernel: tpu_custom_call.1
= control target key start
LH: loop header
LB: loop body
LE: loop exit
PB: predicated region body
PF: predicated region fallthrough
CT: control target
= control target key end

     0   :  { %s860_s0 = inlined_call_operand.vmem [shape: s32[2], index: 0, kind: input, shape index: {}]   ;;  %s861_s4 = inlined_call_operand.vmem [shape: f32[4,20,200], index: 4, kind: input, shape index: {}]   ;;  %s862_s5 = inlined_call_operand.vmem [shape: f32[4,20,200], index: 5, kind: output, shape index: {}]   ;;  %s863_s1 = inlined_call_operand.vmem [shape: s32[2], index: 1, kind: input, shape index: {}]   ;;  %s864_s2 = inlined_call_operand.vmem [shape: s32[8], index: 2, kind: input, shape index: {}]   ;;  %s865_s3 = inlined_call_operand.vmem [shape: s32[8], index: 3, kind: input, shape index: {}]  }
   0x1   :  { %s10_s20 = sshll.u32 %s860_s0, 4  ;;  %s14_s23 = sshll.u32 %s863_s1, 4  ;;  %s11_s20 = int_to_ptr.vmem [resolvable:$true] %s10_s20  ;;  %s15_s23 = int_to_ptr.vmem [resolvable:$true] %s14_s23 }
   0x2   :  { %s498_s24 = scalar_lea.vmem %s11_s20, 16  ;;  %p503_p1 = scmp.lt.s32.totalorder %s11_s20, %s11_s20 }
   0x3   :  { %p499_p0 = scmp.ne.s32.totalorder %s11_s20, %s498_s24  ;;  %p504_p2 = scmp.lt.s32.totalorder %s498_s24, %s498_s24 }
   0x5   :  { %p505_p3 = por %p504_p2, %p503_p1 }
   0x7   :  { %p506_p4 = pnand %p505_p3, %p499_p0 }
   0x9   :  { %509 = shalt.err (!%p506_p4)  }
   0xa   :  { %s572_s25 = smov [#allocation3]   ;;  %s510_s26 = scalar_lea.vmem %s15_s23, 16 }
   0xb   :  { %13 = dma.vmem_to_smem %s11_s20, 16, %s572_s25, [#allocation2] }
   0xc   :  { %p511_p5 = scmp.ne.s32.totalorder %s15_s23, %s510_s26  ;;  %p515_p6 = scmp.lt.s32.totalorder %s15_s23, %s15_s23 }
   0xd   :  { %p516_p7 = scmp.lt.s32.totalorder %s510_s26, %s510_s26 }
   0xf   :  { %p517_p8 = por %p516_p7, %p515_p6 }
  0x11   :  { %p518_p9 = pnand %p517_p8, %p511_p5 }
  0x13   :  { %521 = shalt.err (!%p518_p9)  }
  0x14   :  { %s573_s0 = smov [#allocation4]   ;;  %s18_s28 = sshll.u32 %s864_s2, 4  ;;  %s19_s28 = int_to_ptr.vmem [resolvable:$true] %s18_s28 }
  0x15   :  { %17 = dma.vmem_to_smem %s15_s23, 16, %s573_s0, [#allocation2] }
  0x16   :  { %s22_s6 = sshll.u32 %s865_s3, 4  ;;  %s522_s7 = scalar_lea.vmem %s19_s28, 16  ;;  %s23_s6 = int_to_ptr.vmem [resolvable:$true] %s22_s6 }
  0x17   :  { %p523_p10 = scmp.ne.s32.totalorder %s19_s28, %s522_s7  ;;  %p527_p11 = scmp.lt.s32.totalorder %s19_s28, %s19_s28 }
  0x18   :  { %p528_p12 = scmp.lt.s32.totalorder %s522_s7, %s522_s7 }
  0x1a   :  { %p529_p13 = por %p528_p12, %p527_p11 }
  0x1c   :  { %p530_p0 = pnand %p529_p13, %p523_p10 }
  0x1e   :  { %533 = shalt.err (!%p530_p0)  }
  0x1f   :  { %s574_s8 = smov [#allocation5]   ;;  %s534_s9 = scalar_lea.vmem %s23_s6, 16 }
  0x20   :  { %21 = dma.vmem_to_smem %s19_s28, 16, %s574_s8, [#allocation2] }
  0x21   :  { %p535_p1 = scmp.ne.s32.totalorder %s23_s6, %s534_s9  ;;  %p539_p2 = scmp.lt.s32.totalorder %s23_s6, %s23_s6 }
  0x22   :  { %p540_p3 = scmp.lt.s32.totalorder %s534_s9, %s534_s9 }
  0x24   :  { %p541_p4 = por %p540_p3, %p539_p2 }
  0x26   :  { %p542_p5 = pnand %p541_p4, %p535_p1 }
  0x28   :  { %545 = shalt.err (!%p542_p5)  }
  0x29   :  { %s575_s2 = smov [#allocation6]  }
  0x2a   :  { %25 = dma.vmem_to_smem %s23_s6, 16, %s575_s2, [#allocation2] }
  0x2b   :  { %558 = dma.done.wait [#allocation2], 64 }
  0x2c   :  { %559 = vsyncadd [#allocation2], 4294967232 }
  0x2d   :  { %27 = sfence }
  0x2e   :  { %s618_s3 = smov 0   ;;  %s620_s10 = smov 0  }
  0x2f   :  { %s622_s11 = smov 0  }
  0x30 LB: > { %s45_s12 = sadd.s32 1, %s566_s10  ;;  %p442_p6 = scmp.ge.s32.totalorder %s570_s11, 1  ;;  %s570_s11 = sphi %s622_s11, %s33_s11   ;;  %s566_s10 = sphi %s620_s10, %s891_s10   ;;  %s562_s3 = sphi %s618_s3, %s890_s3  }
  0x31   : > { %p47_p7 = scmp.ge.s32.totalorder %s45_s12, 2  ;;  %p132_p8 = scmp.lt.s32.totalorder %s570_s11, 3 }
  0x33   : > { %s893_s12 = smov (%p47_p7, %s45_s12), 0  ;;  %p133_p9 = pnand %p442_p6, %p132_p8 }
  0x34   : > { %s443_s13 = sshll.u32 (!%p133_p9), %s562_s3, 1  ;;  %v186_v0 = vlaneseq (!%p133_p9)  ;;  %s190_s14 = sld [smem:[#allocation3]] (!%p133_p9) }
  0x35   : > { %136 = sbr.rel (%p133_p9) target bundleno = 98 (0x62), region = 24  ;;  %p164_p10 = scmp.lt.s32.totalorder (!%p133_p9), %s443_s13, 3 }
  0x36   : > { %s191_s15 = sld [smem:[#allocation4]] (!%p133_p9)  ;;  %s447_s16 = sld [smem:[#allocation3 + $0x1]] (!%p133_p9)  ;;  %v187_v1 = vshrl.u32 (!%p133_p9), %v186_v0, 7  ;;  %v638_v2 = vand.u32 (!%p133_p9), 127, %v186_v0 }
  0x37   : > { %s448_s17 = sld [smem:[#allocation4 + $0x1]] (!%p133_p9)  ;;  %s449_s18 = sshll.u32 (!%p133_p9), %s562_s3, 2 }
  0x38   : > { %s235_s19 = sld [smem:[#allocation5 + %s449_s18]] (!%p133_p9)  ;;  %s246_s21 = sadd.s32 (!%p133_p9), 1, %s449_s18  ;;  %v188_v4 = vadd.s32 (!%p133_p9), 8, %v187_v1  ;;  %v655_v8 = vadd.s32 (!%p133_p9), 128, %v638_v2  ;;  %v189_v21 = vadd.s32 (!%p133_p9), 16, %v187_v1 }
  0x39   : > { %s236_s20 = sld [smem:[#allocation6 + %s449_s18]] (!%p133_p9)  ;;  %s467_s0 = sadd.s32 (!%p133_p9), 2, %s449_s18 }
  0x3a   : > { %v640_v3 = vstv (!%p133_p9), %s190_s14  ;;  %s650_s24 = sld [smem:[#allocation5 + %s246_s21]] (!%p133_p9)  ;;  %s311_s27 = sadd.s32 (!%p133_p9), 1, %s467_s0 }
  0x3b   : > { %vm193_vm0 = vcmp.lt.s32.totalorder (!%p133_p9), %v187_v1, %v640_v3  ;;  %s652_s25 = sld [smem:[#allocation6 + %s246_s21]] (!%p133_p9)  ;;  %vm194_vm5 = vcmp.lt.s32.totalorder (!%p133_p9), %v188_v4, %v640_v3 }
  0x3c   : > { %s895_s13 = smov (!%p164_p10, %s443_s13), 3  ;;  %s196_s22 = sadd.s32 %s191_s15, %s190_s14  ;;  %v643_v5 = vstv %s447_s16 }
  0x3d   : > { %s210_s23 = sadd.s32 %s448_s17, %s447_s16  ;;  %v645_v6 = vstv %s196_s22  ;;  %vm207_vm1 = vcmp.lt.s32.totalorder %v187_v1, %v643_v5  ;;  %s469_s26 = smul.u32 48, %s895_s13  ;;  %vm208_vm14 = vcmp.lt.s32.totalorder %v188_v4, %v643_v5 }
  0x3e   : > { %v648_v7 = vstv %s210_s23  ;;  %vm198_vm2 = vcmp.ge.s32.totalorder %v187_v1, %v645_v6  ;;  %v237_v9 = vstv %s235_s19  ;;  %vm199_vm6 = vcmp.ge.s32.totalorder %v188_v4, %v645_v6  ;;  %s687_s6 = sld [smem:[#allocation5 + %s467_s0]] }
  0x3f   : > { %vm212_vm3 = vcmp.ge.s32.totalorder %v187_v1, %v648_v7  ;;  %vm201_vm4 = vmor %vm193_vm0, %vm198_vm2  ;;  %vm238_vm8 = vcmp.lt.s32.totalorder %v638_v2, %v237_v9  ;;  %s240_s1 = sadd.s32 %s236_s20, %s235_s19  ;;  %vm668_vm10 = vcmp.lt.s32.totalorder %v655_v8, %v237_v9  ;;  %s677_s30 = scalar_lea.vmem %s861_s4, %s469_s26  ;;  %vm213_vm15 = vcmp.ge.s32.totalorder %v188_v4, %v648_v7 }
  0x40   : > { %vm215_vm7 = vmor %vm207_vm1, %vm212_vm3  ;;  %v241_v11 = vstv %s240_s1  ;;  %v249_v15 = vstv %s650_s24  ;;  %s696_s8 = sld [smem:[#allocation6 + %s467_s0]]  ;;  %v228_v19 = vld [vmem:[%s677_s30] sm:$0xff]  ;;  %s722_s15 = scalar_lea.vmem %s862_s5, %s469_s26  ;;  %v229_v23 = vld [vmem:[%s677_s30 + $0x8] sm:$0xff] }
  0x41   : > { %vm663_vm9 = vmand %vm201_vm4, %vm215_vm7  ;;  %vm242_vm11 = vcmp.ge.s32.totalorder %v638_v2, %v241_v11  ;;  %vm243_vm12 = vcmp.ge.s32.totalorder %v655_v8, %v241_v11  ;;  %s252_s7 = sadd.s32 %s652_s25, %s650_s24  ;;  %vm250_vm1 = vcmp.lt.s32.totalorder %v638_v2, %v249_v15  ;;  %s705_s9 = sld [smem:[#allocation5 + %s311_s27]]  ;;  %v230_v25 = vld [vmem:[%s677_s30 + $0x10] sm:$0xff]  ;;  %v231_v28 = vld [vmem:[%s677_s30 + $0x18] sm:$0xff] }
  0x42   : > { %vm681_vm13 = vmor %vm194_vm5, %vm199_vm6  ;;  %v253_v16 = vstv %s252_s7  ;;  %s707_s2 = sld [smem:[#allocation6 + %s311_s27]]  ;;  %vm251_vm6 = vcmp.lt.s32.totalorder %v655_v8, %v249_v15  ;;  %v232_v35 = vld [vmem:[%s677_s30 + $0x20] sm:$0xf]  ;;  %v233_v37 = vld [vmem:[%s677_s30 + $0x28] sm:$0xf] }
  0x43   : > { %vm689_vm0 = vmor %vm238_vm8, %vm242_vm11  ;;  %vm254_vm3 = vcmp.ge.s32.totalorder %v638_v2, %v253_v16  ;;  %vm255_vm7 = vcmp.ge.s32.totalorder %v655_v8, %v253_v16  ;;  %v450_v40 = vld [vmem:[%s677_s30 + $0x30] sm:$0xff]  ;;  %v451_v43 = vld [vmem:[%s677_s30 + $0x38] sm:$0xff] }
  0x44   : > { %vm701_vm2 = vmor %vm668_vm10, %vm243_vm12  ;;  %v302_v30 = vstv %s687_s6  ;;  %v452_v45 = vld [vmem:[%s677_s30 + $0x40] sm:$0xff]  ;;  %v453_v46 = vld [vmem:[%s677_s30 + $0x48] sm:$0xff] }
  0x45   : > { %vm710_vm4 = vmor %vm208_vm14, %vm213_vm15  ;;  %vm283_vm14 = vcmask 588800   ;;  %v454_v48 = vld [vmem:[%s677_s30 + $0x50] sm:$0xf]  ;;  %v455_v50 = vld [vmem:[%s677_s30 + $0x58] sm:$0xf] }
  0x46   : > { %vm256_vm5 = vmor %vm250_vm1, %vm254_vm3  ;;  %s305_s13 = sadd.s32 %s696_s8, %s687_s6  ;;  %vm195_vm1 = vcmp.lt.s32.totalorder %v189_v21, %v640_v3 }
  0x47   : > { %vm726_vm8 = vmand %vm689_vm0, %vm256_vm5  ;;  %v306_v31 = vstv %s305_s13  ;;  %v314_v33 = vstv %s705_s9 }
  0x48   : > { %vm270_vm10 = vmand %vm663_vm9, %vm726_vm8  ;;  %s317_s16 = sadd.s32 %s707_s2, %s705_s9 }
  0x49   : > { %v276_v22 = vsel %vm270_vm10, %v228_v19, 0.0  ;;  %vm257_vm11 = vmor %vm251_vm6, %vm255_vm7  ;;  %v318_v34 = vstv %s317_s16 }
  0x4a   : > { %282 = vst [vmem:[%s722_s15] sm:$0xff] %v276_v22  ;;  %vm738_vm12 = vmand %vm701_vm2, %vm257_vm11  ;;  %vm200_vm2 = vcmp.ge.s32.totalorder %v189_v21, %v645_v6  ;;  %vm303_vm11 = vcmp.lt.s32.totalorder %v638_v2, %v302_v30 }
  0x4b   : > { %vm271_vm15 = vmand %vm663_vm9, %vm738_vm12 }
  0x4c   : > { %v277_v26 = vsel %vm271_vm15, %v229_v23, 0.0  ;;  %vm753_vm0 = vmand %vm681_vm13, %vm710_vm4  ;;  %vm209_vm13 = vcmp.lt.s32.totalorder %v189_v21, %v643_v5  ;;  %vm214_vm4 = vcmp.ge.s32.totalorder %v189_v21, %v648_v7  ;;  %vm307_vm15 = vcmp.ge.s32.totalorder %v638_v2, %v306_v31 }
  0x4d   : > { %284 = vst.msk [vmem:[%s722_s15 + $0x8] sm:$0xff] %vm283_vm14, %v277_v26  ;;  %vm272_vm3 = vmand %vm753_vm0, %vm726_vm8 }
  0x4e   : > { %v278_v29 = vsel %vm272_vm3, %v230_v25, 0.0  ;;  %vm273_vm5 = vmand %vm753_vm0, %vm738_vm12  ;;  %vm315_vm3 = vcmp.lt.s32.totalorder %v638_v2, %v314_v33 }
  0x4f   : > { %285 = vst [vmem:[%s722_s15 + $0x10] sm:$0xff] %v278_v29  ;;  %v279_v32 = vsel %vm273_vm5, %v231_v28, 0.0  ;;  %vm203_vm6 = vmor %vm195_vm1, %vm200_vm2  ;;  %vm288_vm2 = vcmask 584704  }
  0x50   : > { %286 = vst.msk [vmem:[%s722_s15 + $0x18] sm:$0xff] %vm283_vm14, %v279_v32  ;;  %vm217_vm7 = vmor %vm209_vm13, %vm214_vm4  ;;  %vm319_vm13 = vcmp.ge.s32.totalorder %v638_v2, %v318_v34 }
  0x51   : > { %vm780_vm10 = vmand %vm203_vm6, %vm217_vm7  ;;  %vm304_vm6 = vcmp.lt.s32.totalorder %v655_v8, %v302_v30  ;;  %vm308_vm7 = vcmp.ge.s32.totalorder %v655_v8, %v306_v31 }
  0x52   : > { %vm274_vm1 = vmand %vm780_vm10, %vm726_vm8 }
  0x53   : > { %v280_v38 = vsel %vm274_vm1, %v232_v35, 0.0  ;;  %vm275_vm4 = vmand %vm780_vm10, %vm738_vm12  ;;  %vm316_vm12 = vcmp.lt.s32.totalorder %v655_v8, %v314_v33 }
  0x54   : > { %287 = vst [vmem:[%s722_s15 + $0x20] sm:$0xf] %v280_v38  ;;  %v281_v39 = vsel %vm275_vm4, %v233_v37, 0.0  ;;  %vm309_vm5 = vmor %vm303_vm11, %vm307_vm15  ;;  %vm320_vm11 = vcmp.ge.s32.totalorder %v655_v8, %v318_v34 }
  0x55   : > { %289 = vst.msk [vmem:[%s722_s15 + $0x28] sm:$0xf] %vm288_vm2, %v281_v39  ;;  %vm321_vm8 = vmor %vm315_vm3, %vm319_vm13 }
  0x56   : > { %vm803_vm1 = vmand %vm309_vm5, %vm321_vm8 }
  0x57   : > { %vm329_vm15 = vmand %vm663_vm9, %vm803_vm1 }
  0x58   : > { %v335_v42 = vsel %vm329_vm15, %v450_v40, 0.0  ;;  %vm310_vm3 = vmor %vm304_vm6, %vm308_vm7 }
  0x59   : > { %458 = vst [vmem:[%s722_s15 + $0x30] sm:$0xff] %v335_v42  ;;  %vm322_vm13 = vmor %vm316_vm12, %vm320_vm11 }
  0x5a   : > { %vm815_vm4 = vmand %vm310_vm3, %vm322_vm13 }
  0x5b   : > { %vm330_vm5 = vmand %vm663_vm9, %vm815_vm4 }
  0x5c   : > { %v336_v47 = vsel %vm330_vm5, %v451_v43, 0.0  ;;  %vm331_vm8 = vmand %vm753_vm0, %vm803_vm1 }
  0x5d   : > { %459 = vst.msk [vmem:[%s722_s15 + $0x38] sm:$0xff] %vm283_vm14, %v336_v47  ;;  %v337_v49 = vsel %vm331_vm8, %v452_v45, 0.0  ;;  %vm332_vm6 = vmand %vm753_vm0, %vm815_vm4 }
  0x5e   : > { %460 = vst [vmem:[%s722_s15 + $0x40] sm:$0xff] %v337_v49  ;;  %v338_v51 = vsel %vm332_vm6, %v453_v46, 0.0  ;;  %vm333_vm9 = vmand %vm780_vm10, %vm803_vm1 }
  0x5f   : > { %461 = vst.msk [vmem:[%s722_s15 + $0x48] sm:$0xff] %vm283_vm14, %v338_v51  ;;  %v339_v52 = vsel %vm333_vm9, %v454_v48, 0.0  ;;  %vm334_vm7 = vmand %vm780_vm10, %vm815_vm4 }
  0x60   : > { %462 = vst [vmem:[%s722_s15 + $0x50] sm:$0xf] %v339_v52  ;;  %v340_v53 = vsel %vm334_vm7, %v455_v50, 0.0 }
  0x61   : > { %463 = vst.msk [vmem:[%s722_s15 + $0x58] sm:$0xf] %vm288_vm2, %v340_v53 }
  0x62 PF: > { %s33_s11 = sadd.s32 1, %s570_s11   ;;  %s890_s3 = smov %s566_s10 }
  0x63   : > { %p30_p11 = scmp.ge.s32.totalorder %s33_s11, 4   ;;  %s891_s10 = smov %s893_s12 }
  0x65   :  { %32 = sbr.rel (!%p30_p11) target bundleno = 48 (0x30), region = 56 }

</bundles_post_ra>
